<compile_context>
chip_gen: v6e
topology: v6e:2x2x1
jax: 0.10.0
libtpu: 0.0.40
codegen_flags: <defaults>
</compile_context>

<pallas_src>
import functools

import numpy as np
import jax
import jax.numpy as jnp
from jax.experimental import pallas as pl
from jax.experimental.pallas import tpu as pltpu


# ---------------------------------------------------------------------------
# Host-side constant builders (shape-only, no data dependence)
# ---------------------------------------------------------------------------

def _bilinear_matrix(out_size, in_size):
    # align_corners=False bilinear (matches F.interpolate / Resize upsample)
    i = np.arange(out_size)
    src = (i + 0.5) * in_size / out_size - 0.5
    i0 = np.floor(src).astype(np.int64)
    frac = (src - i0).astype(np.float32)
    i0c = np.clip(i0, 0, in_size - 1)
    i1c = np.clip(i0 + 1, 0, in_size - 1)
    M = np.zeros((out_size, in_size), np.float32)
    M[np.arange(out_size), i0c] += 1.0 - frac
    M[np.arange(out_size), i1c] += frac
    return M


def _resize_kron(hf, wf, h, w, img_shape):
    # Compose (hf,wf)->(h,w) head upsample with (h,w)->(img_shape,img_shape)
    # wrapper Resize, then express the separable resize on the flattened
    # spatial axis as kron(Rh_total, Rw_total): (img_shape^2, hf*wf).
    # TODO(synk): torchvision Resize may antialias on *down*scale; only the
    # upsample / identity paths occur here, so plain bilinear matches.
    rh = _bilinear_matrix(img_shape, h) @ _bilinear_matrix(h, hf)
    rw = _bilinear_matrix(img_shape, w) @ _bilinear_matrix(w, wf)
    return np.kron(rh, rw).astype(np.float32)


def _shift_matrices(hf, wf):
    # 9 stacked (hw, hw) 0/1 matrices: S_t @ feat == feat shifted by tap t
    # (zero at borders).  Lets the 3x3 ASPP conv run fully in-kernel as MXU
    # work on the VMEM-resident feature map (no host im2col of activations).
    hw = hf * wf
    S = np.zeros((9 * hw, hw), np.float32)
    t = 0
    for dy in (-1, 0, 1):
        for dx in (-1, 0, 1):
            for i in range(hf):
                for j in range(wf):
                    ii, jj = i + dy, j + dx
                    if 0 <= ii < hf and 0 <= jj < wf:
                        S[t * hw + i * wf + j, ii * wf + jj] = 1.0
            t += 1
    return S


def _im2col_hwc(img_hwc, k, stride, pad):
    # Strided im2col of the raw image for the backbone conv (tap-major cols).
    # At stride>=k this is *smaller* than the image, so host-side is cheapest.
    H, W, C = img_hwc.shape
    xp = jnp.pad(img_hwc, ((pad, pad), (pad, pad), (0, 0)))
    ho = (H + 2 * pad - k) // stride + 1
    wo = (W + 2 * pad - k) // stride + 1
    cols = []
    for di in range(k):
        for dj in range(k):
            cols.append(xp[di:di + stride * ho:stride,
                           dj:dj + stride * wo:stride, :])
    p = jnp.concatenate(cols, axis=-1)                  # (ho, wo, k*k*C)
    return p.reshape(ho * wo, k * k * C), ho, wo


# ---------------------------------------------------------------------------
# The single fused Pallas kernel
# ---------------------------------------------------------------------------

def _vmem_spec(shape):
    return pl.BlockSpec(shape, lambda i: tuple(0 for _ in shape))


def _fused_deeplab_kernel(img_ref, p0_ref, s_ref, mr_ref,
                          wb_ref, bb_ref, wa_ref, ba_ref,
                          wp_ref, bp_ref, wpt_ref, wpp_ref, bpr_ref,
                          wc_ref, bc_ref, o_ref, *, hw_f, cb, ca):
    f32 = jnp.float32

    # ---- preprocessing: data-dependent /255 scale (torch: if max(img)>1) ---
    row_max = jnp.max(img_ref[...], axis=1, keepdims=True)        # (H, 1)
    g_max = jnp.max(row_max, axis=0, keepdims=True)                # (1, 1)
    scale = jnp.where(g_max > 1.0, 1.0 / 255.0, 1.0)               # (1, 1)

    # ---- backbone strided 3x3 conv (scale fused into the matmul) ----------
    feat = jnp.dot(p0_ref[...] * scale, wb_ref[...],
                   preferred_element_type=f32)
    feat = jnp.maximum(feat + bb_ref[...], 0.0)                    # (hw_f, cb)

    # ---- ASPP: 1x1 + 3x3 branches fused into one conv with 2*ca lanes -----
    # center tap (t=4): its shift matrix is the identity, so skip its matmul
    acc = jnp.dot(feat, wa_ref[4 * cb:5 * cb, :], preferred_element_type=f32)
    for t in (0, 1, 2, 3, 5, 6, 7, 8):
        shifted = jnp.dot(s_ref[t * hw_f:(t + 1) * hw_f, :], feat,
                          preferred_element_type=f32)              # (hw_f, cb)
        acc = acc + jnp.dot(shifted, wa_ref[t * cb:(t + 1) * cb, :],
                            preferred_element_type=f32)
    b01 = jnp.maximum(acc + ba_ref[...], 0.0)                      # (hw_f, 2ca)

    # ---- global-pool branch: XLU mean + tiny matmul, fused in -------------
    pooled = jnp.mean(feat, axis=0, keepdims=True)                 # (1, cb)
    pooled = jnp.maximum(
        jnp.dot(pooled, wp_ref[...], preferred_element_type=f32) + bp_ref[...],
        0.0)                                                       # (1, ca)

    # ---- projection (pool branch enters as a broadcast (1, ca) row) -------
    proj = jnp.dot(b01, wpt_ref[...], preferred_element_type=f32)
    proj = proj + jnp.dot(pooled, wpp_ref[...], preferred_element_type=f32)
    proj = jnp.maximum(proj + bpr_ref[...], 0.0)                   # (hw_f, ca)

    # ---- classifier --------------------------------------------------------
    logits = jnp.dot(proj, wc_ref[...], preferred_element_type=f32) + bc_ref[...]

    # ---- composed bilinear resize (kron(Rh,Rw)) + threshold epilogue -------
    up = jnp.dot(mr_ref[...], logits, preferred_element_type=f32)  # (OS*OS, nc)
    o_ref[...] = (up > 0.5).astype(o_ref.dtype)


# ---------------------------------------------------------------------------
# Synthetic DeepLabV3-style model (checkpoint cannot be loaded)
# ---------------------------------------------------------------------------

def init_params(key, num_classes, c_backbone=8, c_aspp=8):
    ks = jax.random.split(key, 12)

    def nrm(k, shape, scale=0.2):
        return scale * jax.random.normal(k, shape, jnp.float32)

    return {
        "backbone_w": nrm(ks[0], (3 * 9, c_backbone)),
        "backbone_b": nrm(ks[1], (c_backbone,)),
        "aspp0_w": nrm(ks[2], (c_backbone, c_aspp)),
        "aspp0_b": nrm(ks[3], (c_aspp,)),
        "aspp1_w": nrm(ks[4], (c_backbone * 9, c_aspp)),
        "aspp1_b": nrm(ks[5], (c_aspp,)),
        "aspp_pool_w": nrm(ks[6], (c_backbone, c_aspp)),
        "aspp_pool_b": nrm(ks[7], (c_aspp,)),
        "proj_w": nrm(ks[8], (3 * c_aspp, c_aspp)),
        "proj_b": nrm(ks[9], (c_aspp,)),
        "cls_w": nrm(ks[10], (c_aspp, num_classes)),
        "cls_b": nrm(ks[11], (num_classes,)),
    }


def deeplab_segment_forward(img_hwc, params, *, num_classes, output_stride,
                            img_shape):
    img = jnp.asarray(img_hwc, jnp.float32)
    H, W, C = img.shape
    cb = params["backbone_b"].shape[0]
    ca = params["aspp0_b"].shape[0]

    # Host-side layout prep only (tiny tensors, no data-dependent math):
    img2d = img.reshape(H, W * C)                     # raw image for in-kernel max
    patches0, hf, wf = _im2col_hwc(img, 3, output_stride, 1)
    hw_f = hf * wf

    # Compile-time constants (depend only on static shapes).
    S = jnp.asarray(_shift_matrices(hf, wf))                      # (9*hw_f, hw_f)
    Mr = jnp.asarray(_resize_kron(hf, wf, H, W, img_shape))       # (OS^2, hw_f)

    # Fuse ASPP 1x1 + 3x3 weights into one tap-stacked weight, wide N = 2*ca.
    taps = []
    for t in range(9):
        w1_t = params["aspp1_w"][t * cb:(t + 1) * cb]             # (cb, ca)
        w0_t = params["aspp0_w"] if t == 4 else jnp.zeros((cb, ca), jnp.float32)
        taps.append(jnp.concatenate([w0_t, w1_t], axis=1))
    w_aspp = jnp.concatenate(taps, axis=0)                        # (9*cb, 2*ca)
    b_aspp = jnp.concatenate([params["aspp0_b"],
                              params["aspp1_b"]]).reshape(1, 2 * ca)

    w_proj_top = params["proj_w"][:2 * ca]                        # (2*ca, ca)
    w_proj_pool = params["proj_w"][2 * ca:]                       # (ca, ca)

    kernel = functools.partial(_fused_deeplab_kernel, hw_f=hw_f, cb=cb, ca=ca)
    operands = (
        img2d, patches0, S, Mr,
        params["backbone_w"], params["backbone_b"].reshape(1, cb),
        w_aspp, b_aspp,
        params["aspp_pool_w"], params["aspp_pool_b"].reshape(1, ca),
        w_proj_top, w_proj_pool, params["proj_b"].reshape(1, ca),
        params["cls_w"], params["cls_b"].reshape(1, num_classes),
    )

    out = pl.pallas_call(
        kernel,
        grid=(1,),
        in_specs=[_vmem_spec(tuple(o.shape)) for o in operands],
        out_specs=_vmem_spec((img_shape * img_shape, num_classes)),
        out_shape=jax.ShapeDtypeStruct((img_shape * img_shape, num_classes),
                                       jnp.float32),
        compiler_params=pltpu.CompilerParams(
            dimension_semantics=("arbitrary",)),
    )(*operands)

    # wrapper postprocess: (segment_map[0, 1:] > 0.5).float()
    # (>0.5 already applied in-kernel; thresholding commutes with slicing)
    return out.reshape(img_shape, img_shape, num_classes).transpose(2, 0, 1)[1:]


# ---------------------------------------------------------------------------

if __name__ == "__main__":
    num_classes = 4
    output_stride = 4
    img_shape = 16

    key = jax.random.PRNGKey(0)
    k_img, k_par = jax.random.split(key)

    # ndarray image in [0, 255] (HWC) -> triggers the /255 branch
    img = jax.random.uniform(k_img, (img_shape, img_shape, 3),
                             jnp.float32, 0.0, 255.0)
    params = init_params(k_par, num_classes)

    fwd = jax.jit(functools.partial(deeplab_segment_forward,
                                    num_classes=num_classes,
                                    output_stride=output_stride,
                                    img_shape=img_shape))
    out = fwd(img, params)
    jax.block_until_ready(out)

    assert out.shape == (num_classes - 1, img_shape, img_shape)
    assert out.dtype == jnp.float32
    assert bool(jnp.all((out == 0.0) | (out == 1.0)))
    print("KERNEL_OK")
</pallas_src>

<mosaic_0001>
module attributes {stable_mosaic.version = 11 : i64} {
  func.func @_fused_deeplab_kernel(%arg0: i32, %arg1: memref<16x48xf32, #tpu.memory_space<vmem>>, %arg2: memref<16x27xf32, #tpu.memory_space<vmem>>, %arg3: memref<144x16xf32, #tpu.memory_space<vmem>>, %arg4: memref<256x16xf32, #tpu.memory_space<vmem>>, %arg5: memref<27x8xf32, #tpu.memory_space<vmem>>, %arg6: memref<1x8xf32, #tpu.memory_space<vmem>>, %arg7: memref<72x16xf32, #tpu.memory_space<vmem>>, %arg8: memref<1x16xf32, #tpu.memory_space<vmem>>, %arg9: memref<8x8xf32, #tpu.memory_space<vmem>>, %arg10: memref<1x8xf32, #tpu.memory_space<vmem>>, %arg11: memref<16x8xf32, #tpu.memory_space<vmem>>, %arg12: memref<8x8xf32, #tpu.memory_space<vmem>>, %arg13: memref<1x8xf32, #tpu.memory_space<vmem>>, %arg14: memref<8x4xf32, #tpu.memory_space<vmem>>, %arg15: memref<1x4xf32, #tpu.memory_space<vmem>>, %arg16: memref<256x4xf32, #tpu.memory_space<vmem>>) attributes {dimension_semantics = [#tpu.dimension_semantics<arbitrary>], iteration_bounds = array<i64: 1>, scalar_prefetch = 0 : i64, scratch_operands = 0 : i64, tpu.core_type = #tpu.core_type<tc>, window_params = [{pipeline_mode = #tpu.pipeline_mode<synchronous>, transform_indices = @transform_0, window_bounds = array<i64: 16, 48>}, {pipeline_mode = #tpu.pipeline_mode<synchronous>, transform_indices = @transform_1, window_bounds = array<i64: 16, 27>}, {pipeline_mode = #tpu.pipeline_mode<synchronous>, transform_indices = @transform_2, window_bounds = array<i64: 144, 16>}, {pipeline_mode = #tpu.pipeline_mode<synchronous>, transform_indices = @transform_3, window_bounds = array<i64: 256, 16>}, {pipeline_mode = #tpu.pipeline_mode<synchronous>, transform_indices = @transform_4, window_bounds = array<i64: 27, 8>}, {pipeline_mode = #tpu.pipeline_mode<synchronous>, transform_indices = @transform_5, window_bounds = array<i64: 1, 8>}, {pipeline_mode = #tpu.pipeline_mode<synchronous>, transform_indices = @transform_6, window_bounds = array<i64: 72, 16>}, {pipeline_mode = #tpu.pipeline_mode<synchronous>, transform_indices = @transform_7, window_bounds = array<i64: 1, 16>}, {pipeline_mode = #tpu.pipeline_mode<synchronous>, transform_indices = @transform_8, window_bounds = array<i64: 8, 8>}, {pipeline_mode = #tpu.pipeline_mode<synchronous>, transform_indices = @transform_9, window_bounds = array<i64: 1, 8>}, {pipeline_mode = #tpu.pipeline_mode<synchronous>, transform_indices = @transform_10, window_bounds = array<i64: 16, 8>}, {pipeline_mode = #tpu.pipeline_mode<synchronous>, transform_indices = @transform_11, window_bounds = array<i64: 8, 8>}, {pipeline_mode = #tpu.pipeline_mode<synchronous>, transform_indices = @transform_12, window_bounds = array<i64: 1, 8>}, {pipeline_mode = #tpu.pipeline_mode<synchronous>, transform_indices = @transform_13, window_bounds = array<i64: 8, 4>}, {pipeline_mode = #tpu.pipeline_mode<synchronous>, transform_indices = @transform_14, window_bounds = array<i64: 1, 4>}, {pipeline_mode = #tpu.pipeline_mode<synchronous>, transform_indices = @transform_15, window_bounds = array<i64: 256, 4>}]} {
    %c0 = arith.constant 0 : index
    %c0_0 = arith.constant 0 : index
    %0 = vector.load %arg1[%c0, %c0_0] : memref<16x48xf32, #tpu.memory_space<vmem>>, vector<16x48xf32>
    %cst = arith.constant dense<0xFF800000> : vector<16xf32>
    %1 = vector.multi_reduction <maximumf>, %0, %cst [1] : vector<16x48xf32> to vector<16xf32>
    %2 = vector.shape_cast %1 : vector<16xf32> to vector<16x1xf32>
    %cst_1 = arith.constant dense<0xFF800000> : vector<1xf32>
    %3 = vector.multi_reduction <maximumf>, %2, %cst_1 [0] : vector<16x1xf32> to vector<1xf32>
    %4 = vector.shape_cast %3 : vector<1xf32> to vector<1x1xf32>
    %cst_2 = arith.constant 1.000000e+00 : f32
    %5 = vector.broadcast %cst_2 : f32 to vector<1x1xf32>
    %6 = arith.cmpf ogt, %4, %5 : vector<1x1xf32>
    %cst_3 = arith.constant 0.00392156886 : f32
    %cst_4 = arith.constant 1.000000e+00 : f32
    %7 = vector.broadcast %cst_3 : f32 to vector<1x1xf32>
    %8 = vector.broadcast %cst_4 : f32 to vector<1x1xf32>
    %9 = arith.select %6, %7, %8 : vector<1x1xi1>, vector<1x1xf32>
    %c0_5 = arith.constant 0 : index
    %c0_6 = arith.constant 0 : index
    %10 = vector.load %arg2[%c0_5, %c0_6] : memref<16x27xf32, #tpu.memory_space<vmem>>, vector<16x27xf32>
    %11 = vector.broadcast %9 : vector<1x1xf32> to vector<16x27xf32>
    %12 = arith.mulf %10, %11 : vector<16x27xf32>
    %c0_7 = arith.constant 0 : index
    %c0_8 = arith.constant 0 : index
    %13 = vector.load %arg5[%c0_7, %c0_8] : memref<27x8xf32, #tpu.memory_space<vmem>>, vector<27x8xf32>
    %cst_9 = arith.constant dense<0.000000e+00> : vector<16x8xf32>
    %14 = tpu.matmul %12, %13, %cst_9 {dimension_numbers = #tpu.dot_dimension_numbers<[1], [0], [0], [1], [0, 0, 1, 1], [], []>} : vector<16x27xf32>, vector<27x8xf32>, vector<16x8xf32> -> vector<16x8xf32>
    %c0_10 = arith.constant 0 : index
    %c0_11 = arith.constant 0 : index
    %15 = vector.load %arg6[%c0_10, %c0_11] : memref<1x8xf32, #tpu.memory_space<vmem>>, vector<1x8xf32>
    %16 = vector.broadcast %15 : vector<1x8xf32> to vector<16x8xf32>
    %17 = arith.addf %14, %16 : vector<16x8xf32>
    %cst_12 = arith.constant 0.000000e+00 : f32
    %18 = vector.broadcast %cst_12 : f32 to vector<16x8xf32>
    %19 = arith.maximumf %17, %18 : vector<16x8xf32>
    %c32 = arith.constant 32 : index
    %c0_13 = arith.constant 0 : index
    %20 = vector.load %arg7[%c32, %c0_13] : memref<72x16xf32, #tpu.memory_space<vmem>>, vector<8x16xf32>
    %cst_14 = arith.constant dense<0.000000e+00> : vector<16x16xf32>
    %21 = tpu.matmul %19, %20, %cst_14 {dimension_numbers = #tpu.dot_dimension_numbers<[1], [0], [0], [1], [0, 0, 1, 1], [], []>} : vector<16x8xf32>, vector<8x16xf32>, vector<16x16xf32> -> vector<16x16xf32>
    %c0_15 = arith.constant 0 : index
    %c0_16 = arith.constant 0 : index
    %22 = vector.load %arg3[%c0_15, %c0_16] : memref<144x16xf32, #tpu.memory_space<vmem>>, vector<16x16xf32>
    %cst_17 = arith.constant dense<0.000000e+00> : vector<16x8xf32>
    %23 = tpu.matmul %22, %19, %cst_17 {dimension_numbers = #tpu.dot_dimension_numbers<[1], [0], [0], [1], [0, 0, 1, 1], [], []>} : vector<16x16xf32>, vector<16x8xf32>, vector<16x8xf32> -> vector<16x8xf32>
    %c0_18 = arith.constant 0 : index
    %c0_19 = arith.constant 0 : index
    %24 = vector.load %arg7[%c0_18, %c0_19] : memref<72x16xf32, #tpu.memory_space<vmem>>, vector<8x16xf32>
    %cst_20 = arith.constant dense<0.000000e+00> : vector<16x16xf32>
    %25 = tpu.matmul %23, %24, %cst_20 {dimension_numbers = #tpu.dot_dimension_numbers<[1], [0], [0], [1], [0, 0, 1, 1], [], []>} : vector<16x8xf32>, vector<8x16xf32>, vector<16x16xf32> -> vector<16x16xf32>
    %26 = arith.addf %21, %25 : vector<16x16xf32>
    %c16 = arith.constant 16 : index
    %c0_21 = arith.constant 0 : index
    %27 = vector.load %arg3[%c16, %c0_21] : memref<144x16xf32, #tpu.memory_space<vmem>>, vector<16x16xf32>
    %cst_22 = arith.constant dense<0.000000e+00> : vector<16x8xf32>
    %28 = tpu.matmul %27, %19, %cst_22 {dimension_numbers = #tpu.dot_dimension_numbers<[1], [0], [0], [1], [0, 0, 1, 1], [], []>} : vector<16x16xf32>, vector<16x8xf32>, vector<16x8xf32> -> vector<16x8xf32>
    %c8 = arith.constant 8 : index
    %c0_23 = arith.constant 0 : index
    %29 = vector.load %arg7[%c8, %c0_23] : memref<72x16xf32, #tpu.memory_space<vmem>>, vector<8x16xf32>
    %cst_24 = arith.constant dense<0.000000e+00> : vector<16x16xf32>
    %30 = tpu.matmul %28, %29, %cst_24 {dimension_numbers = #tpu.dot_dimension_numbers<[1], [0], [0], [1], [0, 0, 1, 1], [], []>} : vector<16x8xf32>, vector<8x16xf32>, vector<16x16xf32> -> vector<16x16xf32>
    %31 = arith.addf %26, %30 : vector<16x16xf32>
    %c32_25 = arith.constant 32 : index
    %c0_26 = arith.constant 0 : index
    %32 = vector.load %arg3[%c32_25, %c0_26] : memref<144x16xf32, #tpu.memory_space<vmem>>, vector<16x16xf32>
    %cst_27 = arith.constant dense<0.000000e+00> : vector<16x8xf32>
    %33 = tpu.matmul %32, %19, %cst_27 {dimension_numbers = #tpu.dot_dimension_numbers<[1], [0], [0], [1], [0, 0, 1, 1], [], []>} : vector<16x16xf32>, vector<16x8xf32>, vector<16x8xf32> -> vector<16x8xf32>
    %c16_28 = arith.constant 16 : index
    %c0_29 = arith.constant 0 : index
    %34 = vector.load %arg7[%c16_28, %c0_29] : memref<72x16xf32, #tpu.memory_space<vmem>>, vector<8x16xf32>
    %cst_30 = arith.constant dense<0.000000e+00> : vector<16x16xf32>
    %35 = tpu.matmul %33, %34, %cst_30 {dimension_numbers = #tpu.dot_dimension_numbers<[1], [0], [0], [1], [0, 0, 1, 1], [], []>} : vector<16x8xf32>, vector<8x16xf32>, vector<16x16xf32> -> vector<16x16xf32>
    %36 = arith.addf %31, %35 : vector<16x16xf32>
    %c48 = arith.constant 48 : index
    %c0_31 = arith.constant 0 : index
    %37 = vector.load %arg3[%c48, %c0_31] : memref<144x16xf32, #tpu.memory_space<vmem>>, vector<16x16xf32>
    %cst_32 = arith.constant dense<0.000000e+00> : vector<16x8xf32>
    %38 = tpu.matmul %37, %19, %cst_32 {dimension_numbers = #tpu.dot_dimension_numbers<[1], [0], [0], [1], [0, 0, 1, 1], [], []>} : vector<16x16xf32>, vector<16x8xf32>, vector<16x8xf32> -> vector<16x8xf32>
    %c24 = arith.constant 24 : index
    %c0_33 = arith.constant 0 : index
    %39 = vector.load %arg7[%c24, %c0_33] : memref<72x16xf32, #tpu.memory_space<vmem>>, vector<8x16xf32>
    %cst_34 = arith.constant dense<0.000000e+00> : vector<16x16xf32>
    %40 = tpu.matmul %38, %39, %cst_34 {dimension_numbers = #tpu.dot_dimension_numbers<[1], [0], [0], [1], [0, 0, 1, 1], [], []>} : vector<16x8xf32>, vector<8x16xf32>, vector<16x16xf32> -> vector<16x16xf32>
    %41 = arith.addf %36, %40 : vector<16x16xf32>
    %c80 = arith.constant 80 : index
    %c0_35 = arith.constant 0 : index
    %42 = vector.load %arg3[%c80, %c0_35] : memref<144x16xf32, #tpu.memory_space<vmem>>, vector<16x16xf32>
    %cst_36 = arith.constant dense<0.000000e+00> : vector<16x8xf32>
    %43 = tpu.matmul %42, %19, %cst_36 {dimension_numbers = #tpu.dot_dimension_numbers<[1], [0], [0], [1], [0, 0, 1, 1], [], []>} : vector<16x16xf32>, vector<16x8xf32>, vector<16x8xf32> -> vector<16x8xf32>
    %c40 = arith.constant 40 : index
    %c0_37 = arith.constant 0 : index
    %44 = vector.load %arg7[%c40, %c0_37] : memref<72x16xf32, #tpu.memory_space<vmem>>, vector<8x16xf32>
    %cst_38 = arith.constant dense<0.000000e+00> : vector<16x16xf32>
    %45 = tpu.matmul %43, %44, %cst_38 {dimension_numbers = #tpu.dot_dimension_numbers<[1], [0], [0], [1], [0, 0, 1, 1], [], []>} : vector<16x8xf32>, vector<8x16xf32>, vector<16x16xf32> -> vector<16x16xf32>
    %46 = arith.addf %41, %45 : vector<16x16xf32>
    %c96 = arith.constant 96 : index
    %c0_39 = arith.constant 0 : index
    %47 = vector.load %arg3[%c96, %c0_39] : memref<144x16xf32, #tpu.memory_space<vmem>>, vector<16x16xf32>
    %cst_40 = arith.constant dense<0.000000e+00> : vector<16x8xf32>
    %48 = tpu.matmul %47, %19, %cst_40 {dimension_numbers = #tpu.dot_dimension_numbers<[1], [0], [0], [1], [0, 0, 1, 1], [], []>} : vector<16x16xf32>, vector<16x8xf32>, vector<16x8xf32> -> vector<16x8xf32>
    %c48_41 = arith.constant 48 : index
    %c0_42 = arith.constant 0 : index
    %49 = vector.load %arg7[%c48_41, %c0_42] : memref<72x16xf32, #tpu.memory_space<vmem>>, vector<8x16xf32>
    %cst_43 = arith.constant dense<0.000000e+00> : vector<16x16xf32>
    %50 = tpu.matmul %48, %49, %cst_43 {dimension_numbers = #tpu.dot_dimension_numbers<[1], [0], [0], [1], [0, 0, 1, 1], [], []>} : vector<16x8xf32>, vector<8x16xf32>, vector<16x16xf32> -> vector<16x16xf32>
    %51 = arith.addf %46, %50 : vector<16x16xf32>
    %c112 = arith.constant 112 : index
    %c0_44 = arith.constant 0 : index
    %52 = vector.load %arg3[%c112, %c0_44] : memref<144x16xf32, #tpu.memory_space<vmem>>, vector<16x16xf32>
    %cst_45 = arith.constant dense<0.000000e+00> : vector<16x8xf32>
    %53 = tpu.matmul %52, %19, %cst_45 {dimension_numbers = #tpu.dot_dimension_numbers<[1], [0], [0], [1], [0, 0, 1, 1], [], []>} : vector<16x16xf32>, vector<16x8xf32>, vector<16x8xf32> -> vector<16x8xf32>
    %c56 = arith.constant 56 : index
    %c0_46 = arith.constant 0 : index
    %54 = vector.load %arg7[%c56, %c0_46] : memref<72x16xf32, #tpu.memory_space<vmem>>, vector<8x16xf32>
    %cst_47 = arith.constant dense<0.000000e+00> : vector<16x16xf32>
    %55 = tpu.matmul %53, %54, %cst_47 {dimension_numbers = #tpu.dot_dimension_numbers<[1], [0], [0], [1], [0, 0, 1, 1], [], []>} : vector<16x8xf32>, vector<8x16xf32>, vector<16x16xf32> -> vector<16x16xf32>
    %56 = arith.addf %51, %55 : vector<16x16xf32>
    %c128 = arith.constant 128 : index
    %c0_48 = arith.constant 0 : index
    %57 = vector.load %arg3[%c128, %c0_48] : memref<144x16xf32, #tpu.memory_space<vmem>>, vector<16x16xf32>
    %cst_49 = arith.constant dense<0.000000e+00> : vector<16x8xf32>
    %58 = tpu.matmul %57, %19, %cst_49 {dimension_numbers = #tpu.dot_dimension_numbers<[1], [0], [0], [1], [0, 0, 1, 1], [], []>} : vector<16x16xf32>, vector<16x8xf32>, vector<16x8xf32> -> vector<16x8xf32>
    %c64 = arith.constant 64 : index
    %c0_50 = arith.constant 0 : index
    %59 = vector.load %arg7[%c64, %c0_50] : memref<72x16xf32, #tpu.memory_space<vmem>>, vector<8x16xf32>
    %cst_51 = arith.constant dense<0.000000e+00> : vector<16x16xf32>
    %60 = tpu.matmul %58, %59, %cst_51 {dimension_numbers = #tpu.dot_dimension_numbers<[1], [0], [0], [1], [0, 0, 1, 1], [], []>} : vector<16x8xf32>, vector<8x16xf32>, vector<16x16xf32> -> vector<16x16xf32>
    %61 = arith.addf %56, %60 : vector<16x16xf32>
    %c0_52 = arith.constant 0 : index
    %c0_53 = arith.constant 0 : index
    %62 = vector.load %arg8[%c0_52, %c0_53] : memref<1x16xf32, #tpu.memory_space<vmem>>, vector<1x16xf32>
    %63 = vector.broadcast %62 : vector<1x16xf32> to vector<16x16xf32>
    %64 = arith.addf %61, %63 : vector<16x16xf32>
    %cst_54 = arith.constant 0.000000e+00 : f32
    %65 = vector.broadcast %cst_54 : f32 to vector<16x16xf32>
    %66 = arith.maximumf %64, %65 : vector<16x16xf32>
    %cst_55 = arith.constant dense<0.000000e+00> : vector<8xf32>
    %67 = vector.multi_reduction <add>, %19, %cst_55 [0] : vector<16x8xf32> to vector<8xf32>
    %68 = vector.shape_cast %67 : vector<8xf32> to vector<1x8xf32>
    %cst_56 = arith.constant 1.600000e+01 : f32
    %69 = vector.broadcast %cst_56 : f32 to vector<1x8xf32>
    %70 = arith.divf %68, %69 : vector<1x8xf32>
    %c0_57 = arith.constant 0 : index
    %c0_58 = arith.constant 0 : index
    %71 = vector.load %arg9[%c0_57, %c0_58] : memref<8x8xf32, #tpu.memory_space<vmem>>, vector<8x8xf32>
    %cst_59 = arith.constant dense<0.000000e+00> : vector<1x8xf32>
    %72 = tpu.matmul %70, %71, %cst_59 {dimension_numbers = #tpu.dot_dimension_numbers<[1], [0], [0], [1], [0, 0, 1, 1], [], []>} : vector<1x8xf32>, vector<8x8xf32>, vector<1x8xf32> -> vector<1x8xf32>
    %c0_60 = arith.constant 0 : index
    %c0_61 = arith.constant 0 : index
    %73 = vector.load %arg10[%c0_60, %c0_61] : memref<1x8xf32, #tpu.memory_space<vmem>>, vector<1x8xf32>
    %74 = arith.addf %72, %73 : vector<1x8xf32>
    %cst_62 = arith.constant 0.000000e+00 : f32
    %75 = vector.broadcast %cst_62 : f32 to vector<1x8xf32>
    %76 = arith.maximumf %74, %75 : vector<1x8xf32>
    %c0_63 = arith.constant 0 : index
    %c0_64 = arith.constant 0 : index
    %77 = vector.load %arg11[%c0_63, %c0_64] : memref<16x8xf32, #tpu.memory_space<vmem>>, vector<16x8xf32>
    %cst_65 = arith.constant dense<0.000000e+00> : vector<16x8xf32>
    %78 = tpu.matmul %66, %77, %cst_65 {dimension_numbers = #tpu.dot_dimension_numbers<[1], [0], [0], [1], [0, 0, 1, 1], [], []>} : vector<16x16xf32>, vector<16x8xf32>, vector<16x8xf32> -> vector<16x8xf32>
    %c0_66 = arith.constant 0 : index
    %c0_67 = arith.constant 0 : index
    %79 = vector.load %arg12[%c0_66, %c0_67] : memref<8x8xf32, #tpu.memory_space<vmem>>, vector<8x8xf32>
    %cst_68 = arith.constant dense<0.000000e+00> : vector<1x8xf32>
    %80 = tpu.matmul %76, %79, %cst_68 {dimension_numbers = #tpu.dot_dimension_numbers<[1], [0], [0], [1], [0, 0, 1, 1], [], []>} : vector<1x8xf32>, vector<8x8xf32>, vector<1x8xf32> -> vector<1x8xf32>
    %81 = vector.broadcast %80 : vector<1x8xf32> to vector<16x8xf32>
    %82 = arith.addf %78, %81 : vector<16x8xf32>
    %c0_69 = arith.constant 0 : index
    %c0_70 = arith.constant 0 : index
    %83 = vector.load %arg13[%c0_69, %c0_70] : memref<1x8xf32, #tpu.memory_space<vmem>>, vector<1x8xf32>
    %84 = vector.broadcast %83 : vector<1x8xf32> to vector<16x8xf32>
    %85 = arith.addf %82, %84 : vector<16x8xf32>
    %cst_71 = arith.constant 0.000000e+00 : f32
    %86 = vector.broadcast %cst_71 : f32 to vector<16x8xf32>
    %87 = arith.maximumf %85, %86 : vector<16x8xf32>
    %c0_72 = arith.constant 0 : index
    %c0_73 = arith.constant 0 : index
    %88 = vector.load %arg14[%c0_72, %c0_73] : memref<8x4xf32, #tpu.memory_space<vmem>>, vector<8x4xf32>
    %cst_74 = arith.constant dense<0.000000e+00> : vector<16x4xf32>
    %89 = tpu.matmul %87, %88, %cst_74 {dimension_numbers = #tpu.dot_dimension_numbers<[1], [0], [0], [1], [0, 0, 1, 1], [], []>} : vector<16x8xf32>, vector<8x4xf32>, vector<16x4xf32> -> vector<16x4xf32>
    %c0_75 = arith.constant 0 : index
    %c0_76 = arith.constant 0 : index
    %90 = vector.load %arg15[%c0_75, %c0_76] : memref<1x4xf32, #tpu.memory_space<vmem>>, vector<1x4xf32>
    %91 = vector.broadcast %90 : vector<1x4xf32> to vector<16x4xf32>
    %92 = arith.addf %89, %91 : vector<16x4xf32>
    %c0_77 = arith.constant 0 : index
    %c0_78 = arith.constant 0 : index
    %93 = vector.load %arg4[%c0_77, %c0_78] : memref<256x16xf32, #tpu.memory_space<vmem>>, vector<256x16xf32>
    %cst_79 = arith.constant dense<0.000000e+00> : vector<256x4xf32>
    %94 = tpu.matmul %93, %92, %cst_79 {dimension_numbers = #tpu.dot_dimension_numbers<[1], [0], [0], [1], [0, 0, 1, 1], [], []>} : vector<256x16xf32>, vector<16x4xf32>, vector<256x4xf32> -> vector<256x4xf32>
    %cst_80 = arith.constant 5.000000e-01 : f32
    %95 = vector.broadcast %cst_80 : f32 to vector<256x4xf32>
    %96 = arith.cmpf ogt, %94, %95 : vector<256x4xf32>
    %97 = arith.extui %96 : vector<256x4xi1> to vector<256x4xi32>
    %98 = arith.sitofp %97 : vector<256x4xi32> to vector<256x4xf32>
    %c0_81 = arith.constant 0 : index
    %c0_82 = arith.constant 0 : index
    %99 = vector.load %arg16[%c0_81, %c0_82] : memref<256x4xf32, #tpu.memory_space<vmem>>, vector<256x4xf32>
    tpu.vector_store %arg16[%c0_81, %c0_82], %98 {strides = array<i32>} : memref<256x4xf32, #tpu.memory_space<vmem>>, vector<256x4xf32>,
    return
  }
  func.func @transform_0(%arg0: i32) -> (i32, i32) {
    %c0_i32 = arith.constant 0 : i32
    %c0_i32_0 = arith.constant 0 : i32
    %c0_i32_1 = arith.constant 0 : i32
    return %c0_i32, %c0_i32_0 : i32, i32
  }
  func.func @transform_1(%arg0: i32) -> (i32, i32) {
    %c0_i32 = arith.constant 0 : i32
    %c0_i32_0 = arith.constant 0 : i32
    %c0_i32_1 = arith.constant 0 : i32
    return %c0_i32, %c0_i32_0 : i32, i32
  }
  func.func @transform_2(%arg0: i32) -> (i32, i32) {
    %c0_i32 = arith.constant 0 : i32
    %c0_i32_0 = arith.constant 0 : i32
    %c0_i32_1 = arith.constant 0 : i32
    return %c0_i32, %c0_i32_0 : i32, i32
  }
  func.func @transform_3(%arg0: i32) -> (i32, i32) {
    %c0_i32 = arith.constant 0 : i32
    %c0_i32_0 = arith.constant 0 : i32
    %c0_i32_1 = arith.constant 0 : i32
    return %c0_i32, %c0_i32_0 : i32, i32
  }
  func.func @transform_4(%arg0: i32) -> (i32, i32) {
    %c0_i32 = arith.constant 0 : i32
    %c0_i32_0 = arith.constant 0 : i32
    %c0_i32_1 = arith.constant 0 : i32
    return %c0_i32, %c0_i32_0 : i32, i32
  }
  func.func @transform_5(%arg0: i32) -> (i32, i32) {
    %c0_i32 = arith.constant 0 : i32
    %c0_i32_0 = arith.constant 0 : i32
    %c0_i32_1 = arith.constant 0 : i32
    return %c0_i32, %c0_i32_0 : i32, i32
  }
  func.func @transform_6(%arg0: i32) -> (i32, i32) {
    %c0_i32 = arith.constant 0 : i32
    %c0_i32_0 = arith.constant 0 : i32
    %c0_i32_1 = arith.constant 0 : i32
    return %c0_i32, %c0_i32_0 : i32, i32
  }
  func.func @transform_7(%arg0: i32) -> (i32, i32) {
    %c0_i32 = arith.constant 0 : i32
    %c0_i32_0 = arith.constant 0 : i32
    %c0_i32_1 = arith.constant 0 : i32
    return %c0_i32, %c0_i32_0 : i32, i32
  }
  func.func @transform_8(%arg0: i32) -> (i32, i32) {
    %c0_i32 = arith.constant 0 : i32
    %c0_i32_0 = arith.constant 0 : i32
    %c0_i32_1 = arith.constant 0 : i32
    return %c0_i32, %c0_i32_0 : i32, i32
  }
  func.func @transform_9(%arg0: i32) -> (i32, i32) {
    %c0_i32 = arith.constant 0 : i32
    %c0_i32_0 = arith.constant 0 : i32
    %c0_i32_1 = arith.constant 0 : i32
    return %c0_i32, %c0_i32_0 : i32, i32
  }
  func.func @transform_10(%arg0: i32) -> (i32, i32) {
    %c0_i32 = arith.constant 0 : i32
    %c0_i32_0 = arith.constant 0 : i32
    %c0_i32_1 = arith.constant 0 : i32
    return %c0_i32, %c0_i32_0 : i32, i32
  }
  func.func @transform_11(%arg0: i32) -> (i32, i32) {
    %c0_i32 = arith.constant 0 : i32
    %c0_i32_0 = arith.constant 0 : i32
    %c0_i32_1 = arith.constant 0 : i32
    return %c0_i32, %c0_i32_0 : i32, i32
  }
  func.func @transform_12(%arg0: i32) -> (i32, i32) {
    %c0_i32 = arith.constant 0 : i32
    %c0_i32_0 = arith.constant 0 : i32
    %c0_i32_1 = arith.constant 0 : i32
    return %c0_i32, %c0_i32_0 : i32, i32
  }
  func.func @transform_13(%arg0: i32) -> (i32, i32) {
    %c0_i32 = arith.constant 0 : i32
    %c0_i32_0 = arith.constant 0 : i32
    %c0_i32_1 = arith.constant 0 : i32
    return %c0_i32, %c0_i32_0 : i32, i32
  }
  func.func @transform_14(%arg0: i32) -> (i32, i32) {
    %c0_i32 = arith.constant 0 : i32
    %c0_i32_0 = arith.constant 0 : i32
    %c0_i32_1 = arith.constant 0 : i32
    return %c0_i32, %c0_i32_0 : i32, i32
  }
  func.func @transform_15(%arg0: i32) -> (i32, i32) {
    %c0_i32 = arith.constant 0 : i32
    %c0_i32_0 = arith.constant 0 : i32
    %c0_i32_1 = arith.constant 0 : i32
    return %c0_i32, %c0_i32_0 : i32, i32
  }
}

</mosaic_0001>

<bundles_post_ra>
// kernel: deeplab_segment_forward.1
= control target key start
LH: loop header
LB: loop body
LE: loop exit
PB: predicated region body
PF: predicated region fallthrough
CT: control target
= control target key end

     0   :  { %vm52_vm0 = vcmask 392192   ;;  %vm90_vm1 = vcmask 1042432   ;;  %v2848_v19 = vmov 1.0   ;;  %vm83_vm3 = vcmask 220160   ;;  %s3442_s0 = inlined_call_operand.vmem [shape: f32[16,48], index: 0, kind: input, shape index: {}]   ;;  %s3443_s4 = inlined_call_operand.vmem [shape: f32[27,8], index: 4, kind: input, shape index: {}]   ;;  %s3444_s1 = inlined_call_operand.vmem [shape: f32[16,27], index: 1, kind: input, shape index: {}]   ;;  %s3445_s6 = inlined_call_operand.vmem [shape: f32[72,16], index: 6, kind: input, shape index: {}]   ;;  %s3446_s2 = inlined_call_operand.vmem [shape: f32[144,16], index: 2, kind: input, shape index: {}]   ;;  %s3447_s5 = inlined_call_operand.vmem [shape: f32[1,8], index: 5, kind: input, shape index: {}]   ;;  %s3448_s8 = inlined_call_operand.vmem [shape: f32[8,8], index: 8, kind: input, shape index: {}]   ;;  %s3449_s9 = inlined_call_operand.vmem [shape: f32[1,8], index: 9, kind: input, shape index: {}]   ;;  %s3450_s11 = inlined_call_operand.vmem [shape: f32[8,8], index: 11, kind: input, shape index: {}]   ;;  %s3451_s10 = inlined_call_operand.vmem [shape: f32[16,8], index: 10, kind: input, shape index: {}]   ;;  %s3452_s7 = inlined_call_operand.vmem [shape: f32[1,16], index: 7, kind: input, shape index: {}]   ;;  %s3453_s13 = inlined_call_operand.vmem [shape: f32[8,4], index: 13, kind: input, shape index: {}]   ;;  %s3454_s12 = inlined_call_operand.vmem [shape: f32[1,8], index: 12, kind: input, shape index: {}]   ;;  %s3455_s3 = inlined_call_operand.vmem [shape: f32[256,16], index: 3, kind: input, shape index: {}]   ;;  %s3456_s14 = inlined_call_operand.vmem [shape: f32[1,4], index: 14, kind: input, shape index: {}]   ;;  %s3457_s15 = inlined_call_operand.vmem [shape: f32[256,4], index: 15, kind: output, shape index: {}]  }
   0x1   :  { %v50_v0 = vld [vmem:[%s3442_s0] sm:$0xff]  ;;  %v51_v1 = vld [vmem:[%s3442_s0 + $0x8] sm:$0xff]  ;;  %v75_v4 = vld [vmem:[%s3443_s4 + $0x18] sm:$0x7]  ;;  %vm174_vm4 = vcmask 130048   ;;  %vm257_vm5 = vcmask 64512  }
   0x2   :  { %v53_v2 = vsel %vm52_vm0, %v50_v0, -inf  ;;  %v56_v3 = vsel %vm52_vm0, %v51_v1, -inf  ;;  %v74_v5 = vld [vmem:[%s3443_s4 + $0x10] sm:$0xff]  ;;  %2655 = vmatprep.subr.msk.mxu0 %vm90_vm1, %v75_v4  ;;  %v73_v6 = vld [vmem:[%s3443_s4 + $0x8] sm:$0xff]  ;;  %v72_v7 = vld [vmem:[%s3443_s4] sm:$0xff]  ;;  %v2849_v60 = vmov 0.0  }
   0x3   :  { %54 = vmax.xlane.f32.xlu0 %v53_v2  ;;  %2656 = vmatpush3.msk.msra.mxu0 %vm90_vm1, %v75_v4  ;;  %v68_v17 = vld [vmem:[%s3444_s1] sm:$0xff]  ;;  %v69_v18 = vld [vmem:[%s3444_s1 + $0x8] sm:$0xff]  ;;  %v420_v36 = vld [vmem:[%s3446_s2 + $0x10] sm:$0xff]  ;;  %vm2850_vm6 = vmmov 0   ;;  %vm2397_vm7 = vcmask 31744  }
   0x4   :  { %2657 = vmatprep.subr.mxu0 %v74_v5  ;;  %v171_v23 = vld [vmem:[%s3445_s6 + $0x20] sm:$0xff]  ;;  %v173_v32 = vld [vmem:[%s3446_s2 + $0x8] sm:$0xff]  ;;  %v421_v38 = vld [vmem:[%s3446_s2 + $0x18] sm:$0xff] }
   0x5   :  { %2658 = vmatpush3.msra.mxu0 %v74_v5  ;;  %v172_v24 = vld [vmem:[%s3446_s2] sm:$0xff]  ;;  %v588_v42 = vld [vmem:[%s3446_s2 + $0x28] sm:$0xff]  ;;  %v754_v43 = vld [vmem:[%s3446_s2 + $0x30] sm:$0xff] }
   0x6   :  { %2659 = vmatprep.subr.mxu0 %v73_v6  ;;  %2670 = vmatprep.mubr.msk.f32.mxu1 %vm174_vm4, %v172_v24  ;;  %v2434_v25 = vld [vmem:[%s3447_s5] ss:$0 sm:$0xff]  ;;  %v755_v45 = vld [vmem:[%s3446_s2 + $0x38] sm:$0xff]  ;;  %v921_v46 = vld [vmem:[%s3446_s2 + $0x50] sm:$0xff] }
   0x7   :  { %57 = vmax.xlane.f32.xlu0 %v56_v3  ;;  %2660 = vmatpush3.msra.mxu0 %v73_v6  ;;  %v256_v33 = vld [vmem:[%s3445_s6] sm:$0xff]  ;;  %v922_v48 = vld [vmem:[%s3446_s2 + $0x58] sm:$0xff]  ;;  %v1089_v51 = vld [vmem:[%s3446_s2 + $0x68] sm:$0xff] }
   0x8   :  { %2661 = vmatprep.subr.mxu0 %v72_v7  ;;  %v587_v40 = vld [vmem:[%s3446_s2 + $0x20] sm:$0xff]  ;;  %v1255_v52 = vld [vmem:[%s3446_s2 + $0x70] sm:$0xff]  ;;  %v1256_v54 = vld [vmem:[%s3446_s2 + $0x78] sm:$0xff] }
   0x9   :  { %2662 = vmatpush3.msra.mxu0 %v72_v7  ;;  %v1088_v49 = vld [vmem:[%s3446_s2 + $0x60] sm:$0xff]  ;;  %v1423_v57 = vld [vmem:[%s3446_s2 + $0x88] sm:$0xff]  ;;  %v670_v63 = vld [vmem:[%s3445_s6 + $0x10] sm:$0xff] }
   0xa   :  { %2678 = vmatprep.subr.mxu0 %v171_v23  ;;  %v1422_v55 = vld [vmem:[%s3446_s2 + $0x80] sm:$0xff]  ;;  %v503_v62 = vld [vmem:[%s3445_s6 + $0x8] sm:$0xff]  ;;  %v837_v4 = vld [vmem:[%s3445_s6 + $0x18] sm:$0xff] }
   0xb   :  { %v1611_v58 = vld [vmem:[%s3448_s8] sm:$0xff]  ;;  %v1004_v7 = vld [vmem:[%s3445_s6 + $0x28] sm:$0xff] }
  0x8c   :  { %v55_v8 = vpop.xlane.xlu0 %54 }
  0x90   :  { %v58_v9 = vpop.xlane.xlu0 %57 }
  0x91   :  { %v59_v10 = vmax.f32 %v55_v8, %v58_v9 }
  0x93   :  { %v60_v11 = vrot.slane %v59_v10, 4 }
  0x95   :  { %v61_v12 = vmax.f32 %v59_v10, %v60_v11  ;;  %v1171_v10 = vld [vmem:[%s3445_s6 + $0x30] sm:$0xff] }
  0x97   :  { %v62_v13 = vrot.slane %v61_v12, 2 }
  0x99   :  { %v63_v14 = vmax.f32 %v61_v12, %v62_v13  ;;  %v1338_v13 = vld [vmem:[%s3445_s6 + $0x38] sm:$0xff] }
  0x9b   :  { %v64_v15 = vrot.slane %v63_v14, 1 }
  0x9d   :  { %v65_v16 = vmax.f32 %v63_v14, %v64_v15 }
  0x9f   :  { %vm66_vm2 = vcmp.gt.f32.partialorder %v65_v16, 1.0  ;;  %v1505_v16 = vld [vmem:[%s3445_s6 + $0x40] sm:$0xff] }
  0xa0   :  { %v67_v20 = vsel %vm66_vm2, 0.003921569, %v2848_v19 }
  0xa1   :  { %v70_v21 = vmul.f32 %v68_v17, %v67_v20  ;;  %v71_v22 = vmul.f32 %v69_v18, %v67_v20 }
  0xa3   :  { %2663 = vmatprep.mubr.msk.f32.mxu0 %vm83_vm3, %v70_v21  ;;  %v1612_v21 = vld [vmem:[%s3449_s9] sm:$0x1] }
  0xa4   :  { %2664 = vmatmul.mubr.msk.f32.vlgmr.msra.gmra.mxu0 %vm83_vm3, %v71_v22  ;;  %v1689_v22 = vld [vmem:[%s3450_s11] sm:$0xff] }
  0xa5   :  { %2679 = vmatpush3.msra.mxu0 %v171_v23 }
  0xa6   :  { %2690 = vmatprep.subr.mxu0 %v503_v62 }
 0x164   :  { %v2665_v26 = vpop.f32.mrf.mxu0 }
 0x165   :  { %v166_v27 = vadd.f32 %v2665_v26, %v2434_v25 }
 0x166   :  { %v160_v28 = vpop.f32.mrf.mxu0 }
 0x167   :  { %v2965_v29 = vmax.f32 %v166_v27, 0.0  ;;  %v161_v30 = vadd.f32 %v2434_v25, %v160_v28  ;;  %v1688_v27 = vld [vmem:[%s3451_s10 + $0x8] sm:$0xff]  ;;  %v1687_v28 = vld [vmem:[%s3451_s10] sm:$0xff] }
 0x169   :  { %v2967_v31 = vmax.f32 %v161_v30, 0.0  ;;  %2666 = vmatprep.subr.mxu1 %v2965_v29  ;;  %v1601_v39 = vsel %vm257_vm5, %v2965_v29, 0.0 }
 0x16a   :  { %2667 = vmatpush3.msra.mxu1 %v2965_v29 }
 0x16b   :  { %2668 = vmatprep.subr.mxu1 %v2967_v31  ;;  %2680 = vmatprep.mubr.msk.f32.mxu0 %vm257_vm5, %v2967_v31  ;;  %v1600_v37 = vsel %vm257_vm5, %v2967_v31, 0.0 }
 0x16c   :  { %2669 = vmatpush3.msra.mxu1 %v2967_v31  ;;  %2681 = vmatmul.mubr.msk.f32.vlgmr.msra.gmra.mxu0 %vm257_vm5, %v2965_v29  ;;  %v1602_v41 = vadd.f32 %v1601_v39, %v1600_v37 }
 0x16d   :  { %2671 = vmatmul.mubr.msk.f32.vlgmr.msra.gmra.mxu1 %vm174_vm4, %v173_v32  ;;  %2673 = vmatprep.subr.mxu1 %v256_v33 }
 0x16e   :  { %2674 = vmatpush3.msra.mxu1 %v256_v33  ;;  %v1603_v44 = vrot.slane %v1602_v41, 4  ;;  %2691 = vmatpush3.msra.mxu0 %v503_v62 }
 0x16f   :  { %2683 = vmatprep.subr.mxu1 %v2965_v29  ;;  %2702 = vmatprep.subr.mxu0 %v670_v63 }
 0x170   :  { %v1604_v47 = vadd.f32 %v1603_v44, %v1602_v41 }
 0x172   :  { %v1605_v50 = vrot.slane %v1604_v47, 2 }
 0x174   :  { %v1606_v53 = vadd.f32 %v1605_v50, %v1604_v47 }
 0x176   :  { %v1607_v56 = vrot.slane %v1606_v53, 1 }
 0x178   :  { %v1608_v59 = vadd.f32 %v1607_v56, %v1606_v53 }
 0x17a   :  { %v1610_v61 = vmul.f32 0.0625, %v1608_v59  ;;  %v2472_v59 = vld [vmem:[%s3452_s7] ss:$0 sm:$0xff] }
 0x22d   :  { %v2672_v34 = vpop.f32.mrf.mxu1 }
 0x22f   :  { %v247_v35 = vpop.f32.mrf.mxu1 }
 0x230   :  { %2675 = vmatprep.mubr.msk.f32.mxu1 %vm257_vm5, %v247_v35 }
 0x231   :  { %2676 = vmatmul.mubr.msk.f32.vlgmr.msra.gmra.mxu1 %vm257_vm5, %v2672_v34 }
 0x232   :  { %2684 = vmatpush3.msra.mxu1 %v2965_v29  ;;  %2687 = vmatprep.mubr.msk.f32.mxu1 %vm174_vm4, %v420_v36 }
 0x233   :  { %2685 = vmatprep.subr.mxu1 %v2967_v31 }
 0x234   :  { %2686 = vmatpush3.msra.mxu1 %v2967_v31 }
 0x235   :  { %2695 = vmatprep.subr.mxu1 %v2965_v29  ;;  %2688 = vmatmul.mubr.msk.f32.vlgmr.msra.gmra.mxu1 %vm174_vm4, %v421_v38 }
 0x236   :  { %2696 = vmatpush3.msra.mxu1 %v2965_v29  ;;  %2699 = vmatprep.mubr.msk.f32.mxu1 %vm174_vm4, %v587_v40 }
 0x237   :  { %2697 = vmatprep.subr.mxu1 %v2967_v31 }
 0x238   :  { %2698 = vmatpush3.msra.mxu1 %v2967_v31 }
 0x239   :  { %2707 = vmatprep.subr.mxu1 %v2965_v29  ;;  %2700 = vmatmul.mubr.msk.f32.vlgmr.msra.gmra.mxu1 %vm174_vm4, %v588_v42 }
 0x23a   :  { %2708 = vmatpush3.msra.mxu1 %v2965_v29  ;;  %2711 = vmatprep.mubr.msk.f32.mxu1 %vm174_vm4, %v754_v43 }
 0x23b   :  { %2709 = vmatprep.subr.mxu1 %v2967_v31 }
 0x23c   :  { %2710 = vmatpush3.msra.mxu1 %v2967_v31 }
 0x23d   :  { %2719 = vmatprep.subr.mxu1 %v2965_v29  ;;  %2712 = vmatmul.mubr.msk.f32.vlgmr.msra.gmra.mxu1 %vm174_vm4, %v755_v45 }
 0x23e   :  { %2720 = vmatpush3.msra.mxu1 %v2965_v29  ;;  %2723 = vmatprep.mubr.msk.f32.mxu1 %vm174_vm4, %v921_v46 }
 0x23f   :  { %2721 = vmatprep.subr.mxu1 %v2967_v31 }
 0x240   :  { %2722 = vmatpush3.msra.mxu1 %v2967_v31 }
 0x241   :  { %2731 = vmatprep.subr.mxu1 %v2965_v29  ;;  %2724 = vmatmul.mubr.msk.f32.vlgmr.msra.gmra.mxu1 %vm174_vm4, %v922_v48 }
 0x242   :  { %2732 = vmatpush3.msra.mxu1 %v2965_v29  ;;  %2735 = vmatprep.mubr.msk.f32.mxu1 %vm174_vm4, %v1088_v49 }
 0x243   :  { %2733 = vmatprep.subr.mxu1 %v2967_v31 }
 0x244   :  { %2734 = vmatpush3.msra.mxu1 %v2967_v31 }
 0x245   :  { %2743 = vmatprep.subr.mxu1 %v2965_v29  ;;  %2736 = vmatmul.mubr.msk.f32.vlgmr.msra.gmra.mxu1 %vm174_vm4, %v1089_v51 }
 0x246   :  { %2744 = vmatpush3.msra.mxu1 %v2965_v29  ;;  %2747 = vmatprep.mubr.msk.f32.mxu1 %vm174_vm4, %v1255_v52 }
 0x247   :  { %2745 = vmatprep.subr.mxu1 %v2967_v31 }
 0x248   :  { %2746 = vmatpush3.msra.mxu1 %v2967_v31 }
 0x249   :  { %2755 = vmatprep.subr.mxu1 %v2965_v29  ;;  %2748 = vmatmul.mubr.msk.f32.vlgmr.msra.gmra.mxu1 %vm174_vm4, %v1256_v54 }
 0x24a   :  { %2756 = vmatpush3.msra.mxu1 %v2965_v29  ;;  %2759 = vmatprep.mubr.msk.f32.mxu1 %vm174_vm4, %v1422_v55  ;;  %v2682_v29 = vpop.f32.mrf.mxu0 }
 0x24b   :  { %2757 = vmatprep.subr.mxu1 %v2967_v31 }
 0x24c   :  { %2758 = vmatpush3.msra.mxu1 %v2967_v31  ;;  %v411_v30 = vpop.f32.mrf.mxu0 }
 0x24d   :  { %2760 = vmatmul.mubr.msk.f32.vlgmr.msra.gmra.mxu1 %vm174_vm4, %v1423_v57  ;;  %2767 = vmatprep.subr.mxu1 %v2849_v60 }
 0x24e   :  { %2768 = vmatpush3.msra.mxu1 %v1611_v58  ;;  %2769 = vmatprep.mubr.msk.f32.mxu1 %vm2850_vm6, %v2849_v60 }
 0x24f   :  { %2777 = vmatprep.subr.mxu1 %v1688_v27 }
 0x251   :  { %2770 = vmatmul.mubr.msk.f32.vlgmr.msra.gmra.mxu1 %vm257_vm5, %v1610_v61 }
 0x252   :  { %2778 = vmatpush3.msra.mxu1 %v1688_v27  ;;  %v1949_v27 = vld [vmem:[%s3455_s3 + $0x8] sm:$0xff] }
 0x253   :  { %2779 = vmatprep.subr.mxu1 %v1687_v28 }
 0x254   :  { %2780 = vmatpush3.msra.mxu1 %v1687_v28  ;;  %v1964_v28 = vld [vmem:[%s3455_s3 + $0x80] sm:$0xff] }
 0x2f1   :  { %v3087_v0 = vpop.f32.mrf.mxu1 }
 0x2f2   :  { %v417_v37 = vadd.f32 %v2682_v29, %v3087_v0  ;;  %v1950_v29 = vld [vmem:[%s3455_s3 + $0x10] sm:$0xff] }
 0x2f3   :  { %v3089_v1 = vpop.f32.mrf.mxu1 }
 0x2f4   :  { %v412_v39 = vadd.f32 %v411_v30, %v3089_v1  ;;  %v1965_v30 = vld [vmem:[%s3455_s3 + $0x88] sm:$0xff] }
 0x2f5   :  { %v2689_v2 = vpop.f32.mrf.mxu1 }
 0x2f7   :  { %v494_v3 = vpop.f32.mrf.mxu1 }
 0x2f8   :  { %2692 = vmatprep.mubr.msk.f32.mxu0 %vm257_vm5, %v494_v3 }
 0x2f9   :  { %2693 = vmatmul.mubr.msk.f32.vlgmr.msra.gmra.mxu0 %vm257_vm5, %v2689_v2  ;;  %v2701_v5 = vpop.f32.mrf.mxu1 }
 0x2fa   :  { %2703 = vmatpush3.msra.mxu0 %v670_v63 }
 0x2fb   :  { %v661_v6 = vpop.f32.mrf.mxu1  ;;  %2714 = vmatprep.subr.mxu0 %v837_v4 }
 0x2fc   :  { %2704 = vmatprep.mubr.msk.f32.mxu0 %vm257_vm5, %v661_v6  ;;  %v1763_v6 = vlaneseq }
 0x2fd   :  { %2705 = vmatmul.mubr.msk.f32.vlgmr.msra.gmra.mxu0 %vm257_vm5, %v2701_v5  ;;  %v2713_v8 = vpop.f32.mrf.mxu1  ;;  %v1859_v5 = vld [vmem:[%s3453_s13] sm:$0xff] }
 0x2fe   :  { %2715 = vmatpush3.msra.mxu0 %v837_v4 }
 0x2ff   :  { %v828_v9 = vpop.f32.mrf.mxu1  ;;  %2726 = vmatprep.subr.mxu0 %v1004_v7 }
 0x300   :  { %2716 = vmatprep.mubr.msk.f32.mxu0 %vm257_vm5, %v828_v9 }
 0x301   :  { %2717 = vmatmul.mubr.msk.f32.vlgmr.msra.gmra.mxu0 %vm257_vm5, %v2713_v8  ;;  %v2725_v11 = vpop.f32.mrf.mxu1 }
 0x302   :  { %2727 = vmatpush3.msra.mxu0 %v1004_v7  ;;  %v1764_v7 = vshrl.u32 %v1763_v6, 7 }
 0x303   :  { %v995_v12 = vpop.f32.mrf.mxu1  ;;  %2738 = vmatprep.subr.mxu0 %v1171_v10 }
 0x304   :  { %2728 = vmatprep.mubr.msk.f32.mxu0 %vm257_vm5, %v995_v12  ;;  %v1765_v8 = vsub.s32 0, %v1764_v7  ;;  %v2477_v12 = vld [vmem:[%s3454_s12] ss:$0 sm:$0xff] }
 0x305   :  { %2729 = vmatmul.mubr.msk.f32.vlgmr.msra.gmra.mxu0 %vm257_vm5, %v2725_v11  ;;  %v2737_v14 = vpop.f32.mrf.mxu1 }
 0x306   :  { %2739 = vmatpush3.msra.mxu0 %v1171_v10 }
 0x307   :  { %v1162_v15 = vpop.f32.mrf.mxu1  ;;  %2750 = vmatprep.subr.mxu0 %v1338_v13 }
 0x308   :  { %2740 = vmatprep.mubr.msk.f32.mxu0 %vm257_vm5, %v1162_v15 }
 0x309   :  { %2741 = vmatmul.mubr.msk.f32.vlgmr.msra.gmra.mxu0 %vm257_vm5, %v2737_v14  ;;  %v2749_v17 = vpop.f32.mrf.mxu1 }
 0x30a   :  { %2751 = vmatpush3.msra.mxu0 %v1338_v13 }
 0x30b   :  { %v1329_v18 = vpop.f32.mrf.mxu1  ;;  %2762 = vmatprep.subr.mxu0 %v1505_v16 }
 0x30c   :  { %2752 = vmatprep.mubr.msk.f32.mxu0 %vm257_vm5, %v1329_v18 }
 0x30d   :  { %2753 = vmatmul.mubr.msk.f32.vlgmr.msra.gmra.mxu0 %vm257_vm5, %v2749_v17  ;;  %v2761_v19 = vpop.f32.mrf.mxu1 }
 0x30e   :  { %2763 = vmatpush3.msra.mxu0 %v1505_v16 }
 0x30f   :  { %v1496_v20 = vpop.f32.mrf.mxu1  ;;  %2772 = vmatprep.subr.mxu0 %v2849_v60 }
 0x310   :  { %2764 = vmatprep.mubr.msk.f32.mxu0 %vm257_vm5, %v1496_v20  ;;  %v1948_v20 = vld [vmem:[%s3455_s3] sm:$0xff] }
 0x311   :  { %2765 = vmatmul.mubr.msk.f32.vlgmr.msra.gmra.mxu0 %vm257_vm5, %v2761_v19  ;;  %v1682_v23 = vpop.f32.mrf.mxu1  ;;  %v1962_v19 = vld [vmem:[%s3455_s3 + $0x70] sm:$0xff] }
 0x312   :  { %v1683_v24 = vadd.f32 %v1682_v23, %v1612_v21  ;;  %2773 = vmatpush3.msra.mxu0 %v1689_v22  ;;  %2774 = vmatprep.mubr.msk.f32.mxu0 %vm2850_vm6, %v2849_v60  ;;  %v2478_v21 = vld [vmem:[%s3456_s14] ss:$0 sm:$0xff] }
 0x313   :  { %v2771_v25 = vpop.f32.mrf.mxu1  ;;  %2784 = vmatprep.subr.mxu0 %v1859_v5 }
 0x314   :  { %v1686_v26 = vmax.f32 %v1683_v24, 0.0 }
 0x316   :  { %2775 = vmatmul.mubr.msk.f32.vlgmr.msra.gmra.mxu0 %vm257_vm5, %v1686_v26  ;;  %v1963_v26 = vld [vmem:[%s3455_s3 + $0x78] sm:$0xff] }
 0x317   :  { %2785 = vmatpush3.msra.mxu0 %v1859_v5 }
 0x3b9   :  { %v2694_v31 = vpop.f32.mrf.mxu0 }
 0x3ba   :  { %v586_v40 = vadd.f32 %v2694_v31, %v417_v37  ;;  %v1951_v31 = vld [vmem:[%s3455_s3 + $0x18] sm:$0xff]  ;;  %v1954_v37 = vld [vmem:[%s3455_s3 + $0x30] sm:$0xff] }
 0x3bb   :  { %v576_v32 = vpop.f32.mrf.mxu0 }
 0x3bc   :  { %v585_v42 = vadd.f32 %v576_v32, %v412_v39  ;;  %v1966_v32 = vld [vmem:[%s3455_s3 + $0x90] sm:$0xff]  ;;  %v1955_v39 = vld [vmem:[%s3455_s3 + $0x38] sm:$0xff] }
 0x3bd   :  { %v2706_v33 = vpop.f32.mrf.mxu0 }
 0x3be   :  { %v753_v43 = vadd.f32 %v2706_v33, %v586_v40  ;;  %v1952_v33 = vld [vmem:[%s3455_s3 + $0x20] sm:$0xff]  ;;  %v1970_v40 = vld [vmem:[%s3455_s3 + $0xb0] sm:$0xff] }
 0x3bf   :  { %v743_v34 = vpop.f32.mrf.mxu0 }
 0x3c0   :  { %v752_v45 = vadd.f32 %v743_v34, %v585_v42  ;;  %v1967_v34 = vld [vmem:[%s3455_s3 + $0x98] sm:$0xff] }
 0x3c1   :  { %v2718_v35 = vpop.f32.mrf.mxu0  ;;  %v1971_v42 = vld [vmem:[%s3455_s3 + $0xb8] sm:$0xff] }
 0x3c2   :  { %v920_v46 = vadd.f32 %v2718_v35, %v753_v43  ;;  %v1953_v35 = vld [vmem:[%s3455_s3 + $0x28] sm:$0xff] }
 0x3c3   :  { %v910_v36 = vpop.f32.mrf.mxu0  ;;  %v1957_v43 = vld [vmem:[%s3455_s3 + $0x48] sm:$0xff] }
 0x3c4   :  { %v919_v48 = vadd.f32 %v910_v36, %v752_v45  ;;  %v1968_v36 = vld [vmem:[%s3455_s3 + $0xa0] sm:$0xff]  ;;  %v1958_v45 = vld [vmem:[%s3455_s3 + $0x50] sm:$0xff] }
 0x3c5   :  { %v2730_v38 = vpop.f32.mrf.mxu0 }
 0x3c6   :  { %v1087_v49 = vadd.f32 %v2730_v38, %v920_v46  ;;  %v1969_v38 = vld [vmem:[%s3455_s3 + $0xa8] sm:$0xff] }
 0x3c7   :  { %v1077_v41 = vpop.f32.mrf.mxu0  ;;  %v1973_v46 = vld [vmem:[%s3455_s3 + $0xc8] sm:$0xff] }
 0x3c8   :  { %v1086_v51 = vadd.f32 %v1077_v41, %v919_v48  ;;  %v1956_v41 = vld [vmem:[%s3455_s3 + $0x40] sm:$0xff]  ;;  %v1974_v48 = vld [vmem:[%s3455_s3 + $0xd0] sm:$0xff] }
 0x3c9   :  { %v2742_v44 = vpop.f32.mrf.mxu0 }
 0x3ca   :  { %v1254_v52 = vadd.f32 %v2742_v44, %v1087_v49  ;;  %v1972_v44 = vld [vmem:[%s3455_s3 + $0xc0] sm:$0xff] }
 0x3cb   :  { %v1244_v47 = vpop.f32.mrf.mxu0  ;;  %v1960_v49 = vld [vmem:[%s3455_s3 + $0x60] sm:$0xff] }
 0x3cc   :  { %v1253_v54 = vadd.f32 %v1244_v47, %v1086_v51  ;;  %v1959_v47 = vld [vmem:[%s3455_s3 + $0x58] sm:$0xff]  ;;  %v1961_v51 = vld [vmem:[%s3455_s3 + $0x68] sm:$0xff] }
 0x3cd   :  { %v2754_v50 = vpop.f32.mrf.mxu0 }
 0x3ce   :  { %v1421_v55 = vadd.f32 %v2754_v50, %v1254_v52  ;;  %v1975_v50 = vld [vmem:[%s3455_s3 + $0xd8] sm:$0xff]  ;;  %v1976_v52 = vld [vmem:[%s3455_s3 + $0xe0] sm:$0xff] }
 0x3cf   :  { %v1411_v53 = vpop.f32.mrf.mxu0 }
 0x3d0   :  { %v1420_v57 = vadd.f32 %v1411_v53, %v1253_v54  ;;  %v1977_v53 = vld [vmem:[%s3455_s3 + $0xe8] sm:$0xff]  ;;  %v1978_v54 = vld [vmem:[%s3455_s3 + $0xf0] sm:$0xff] }
 0x3d1   :  { %v2766_v56 = vpop.f32.mrf.mxu0 }
 0x3d2   :  { %v1588_v58 = vadd.f32 %v2766_v56, %v1421_v55  ;;  %v1979_v55 = vld [vmem:[%s3455_s3 + $0xf8] sm:$0xff] }
 0x3d3   :  { %v1578_v61 = vpop.f32.mrf.mxu0 }
 0x3d4   :  { %v1587_v62 = vadd.f32 %v1578_v61, %v1420_v57  ;;  %v1597_v63 = vadd.f32 %v2472_v59, %v1588_v58 }
 0x3d6   :  { %v1596_v0 = vadd.f32 %v2472_v59, %v1587_v62  ;;  %v1759_v1 = vpop.f32.mrf.mxu0  ;;  %v1599_v4 = vmax.f32 %v1597_v63, 0.0 }
 0x3d7   :  { %v1766_v9 = vrot.slane %v1759_v1, %v1765_v8 }
 0x3d8   :  { %v1598_v2 = vmax.f32 %v1596_v0, 0.0  ;;  %v2776_v3 = vpop.f32.mrf.mxu0 }
 0x3da   :  { %2781 = vmatprep.mubr.msk.f32.mxu1 %vm174_vm4, %v1598_v2 }
 0x3db   :  { %2782 = vmatmul.mubr.msk.f32.vlgmr.msra.gmra.mxu1 %vm174_vm4, %v1599_v4 }
 0x3dc   :  { %2814 = vmatprep.mubr.msk.f32.mxu1 %vm174_vm4, %v1962_v19 }
 0x49b   :  { %v2783_v10 = vpop.f32.mrf.mxu1 }
 0x49c   :  { %v1845_v11 = vadd.f32 %v2783_v10, %v1766_v9 }
 0x49d   :  { %v1839_v13 = vpop.f32.mrf.mxu1 }
 0x49e   :  { %v1840_v14 = vadd.f32 %v1839_v13, %v1766_v9  ;;  %v1856_v15 = vadd.f32 %v2477_v12, %v1845_v11 }
 0x4a0   :  { %v1855_v16 = vadd.f32 %v2477_v12, %v1840_v14  ;;  %v1858_v18 = vmax.f32 %v1856_v15, 0.0 }
 0x4a2   :  { %v1857_v17 = vmax.f32 %v1855_v16, 0.0 }
 0x4a4   :  { %2786 = vmatprep.mubr.msk.f32.mxu0 %vm257_vm5, %v1857_v17 }
 0x4a5   :  { %2787 = vmatmul.mubr.msk.f32.vlgmr.msra.gmra.mxu0 %vm257_vm5, %v1858_v18 }
 0x4a6   :  { %2793 = vmatprep.mubr.msk.f32.mxu0 %vm174_vm4, %v1948_v20 }
 0x565   :  { %v2788_v22 = vpop.f32.mrf.mxu0 }
 0x566   :  { %v1945_v23 = vadd.f32 %v2788_v22, %v2478_v21 }
 0x567   :  { %v1939_v24 = vpop.f32.mrf.mxu0 }
 0x568   :  { %v1940_v25 = vadd.f32 %v2478_v21, %v1939_v24  ;;  %2789 = vmatprep.subr.mxu0 %v1945_v23  ;;  %2841 = vmatprep.subr.mxu1 %v1945_v23 }
 0x569   :  { %2790 = vmatpush3.msra.mxu0 %v1945_v23  ;;  %2843 = vmatpush3.msra.mxu1 %v1945_v23 }
 0x56a   :  { %2791 = vmatprep.subr.mxu0 %v1940_v25  ;;  %2842 = vmatprep.subr.mxu1 %v1940_v25 }
 0x56b   :  { %2792 = vmatpush3.msra.mxu0 %v1940_v25  ;;  %2844 = vmatpush3.msra.mxu1 %v1940_v25 }
 0x56c   :  { %2815 = vmatmul.mubr.msk.f32.vlgmr.msra.gmra.mxu1 %vm174_vm4, %v1963_v26  ;;  %2794 = vmatmul.mubr.msk.f32.vlgmr.msra.gmra.mxu0 %vm174_vm4, %v1949_v27 }
 0x56d   :  { %2817 = vmatprep.mubr.msk.f32.mxu1 %vm174_vm4, %v1964_v28  ;;  %2796 = vmatprep.mubr.msk.f32.mxu0 %vm174_vm4, %v1950_v29 }
 0x570   :  { %2818 = vmatmul.mubr.msk.f32.gmra.mxu1 %vm174_vm4, %v1965_v30  ;;  %2797 = vmatmul.mubr.msk.f32.gmra.mxu0 %vm174_vm4, %v1951_v31 }
 0x571   :  { %2820 = vmatprep.mubr.msk.f32.mxu1 %vm174_vm4, %v1966_v32  ;;  %2799 = vmatprep.mubr.msk.f32.mxu0 %vm174_vm4, %v1952_v33 }
 0x574   :  { %2821 = vmatmul.mubr.msk.f32.gmra.mxu1 %vm174_vm4, %v1967_v34  ;;  %2800 = vmatmul.mubr.msk.f32.gmra.mxu0 %vm174_vm4, %v1953_v35 }
 0x575   :  { %2823 = vmatprep.mubr.msk.f32.mxu1 %vm174_vm4, %v1968_v36  ;;  %2802 = vmatprep.mubr.msk.f32.mxu0 %vm174_vm4, %v1954_v37 }
 0x578   :  { %2824 = vmatmul.mubr.msk.f32.gmra.mxu1 %vm174_vm4, %v1969_v38  ;;  %2803 = vmatmul.mubr.msk.f32.gmra.mxu0 %vm174_vm4, %v1955_v39 }
 0x579   :  { %2826 = vmatprep.mubr.msk.f32.mxu1 %vm174_vm4, %v1970_v40  ;;  %2805 = vmatprep.mubr.msk.f32.mxu0 %vm174_vm4, %v1956_v41 }
 0x57c   :  { %2827 = vmatmul.mubr.msk.f32.gmra.mxu1 %vm174_vm4, %v1971_v42  ;;  %2806 = vmatmul.mubr.msk.f32.gmra.mxu0 %vm174_vm4, %v1957_v43 }
 0x57d   :  { %2829 = vmatprep.mubr.msk.f32.mxu1 %vm174_vm4, %v1972_v44  ;;  %2808 = vmatprep.mubr.msk.f32.mxu0 %vm174_vm4, %v1958_v45 }
 0x580   :  { %2830 = vmatmul.mubr.msk.f32.gmra.mxu1 %vm174_vm4, %v1973_v46  ;;  %2809 = vmatmul.mubr.msk.f32.gmra.mxu0 %vm174_vm4, %v1959_v47 }
 0x581   :  { %2832 = vmatprep.mubr.msk.f32.mxu1 %vm174_vm4, %v1974_v48  ;;  %2811 = vmatprep.mubr.msk.f32.mxu0 %vm174_vm4, %v1960_v49 }
 0x584   :  { %2833 = vmatmul.mubr.msk.f32.gmra.mxu1 %vm174_vm4, %v1975_v50  ;;  %2812 = vmatmul.mubr.msk.f32.gmra.mxu0 %vm174_vm4, %v1961_v51 }
 0x585   :  { %2835 = vmatprep.mubr.msk.f32.mxu1 %vm174_vm4, %v1976_v52 }
 0x588   :  { %2836 = vmatmul.mubr.msk.f32.gmra.mxu1 %vm174_vm4, %v1977_v53 }
 0x589   :  { %2838 = vmatprep.mubr.msk.f32.mxu1 %vm174_vm4, %v1978_v54 }
 0x58c   :  { %2839 = vmatmul.mubr.msk.f32.gmra.mxu1 %vm174_vm4, %v1979_v55 }
 0x62c   :  { %v2816_v56 = vpop.f32.mrf.mxu1  ;;  %v2795_v57 = vpop.f32.mrf.mxu0 }
 0x62d   :  { %vm2316_vm8 = vcmp.gt.f32.partialorder %v2816_v56, 0.5  ;;  %vm2302_vm9 = vcmp.gt.f32.partialorder %v2795_v57, 0.5 }
 0x62e   :  { %v2528_v58 = vsel %vm2316_vm8, 1.0, %v2849_v60  ;;  %v2212_v59 = vpop.f32.mrf.mxu1  ;;  %v2514_v61 = vsel %vm2302_vm9, 1.0, %v2849_v60  ;;  %v2142_v62 = vpop.f32.mrf.mxu0 }
 0x62f   :  { %2413 = vst.msk [vmem:[%s3457_s15 + $0x78] sm:$0xff] %vm2397_vm7, %v2528_v58  ;;  %vm2315_vm10 = vcmp.gt.f32.partialorder %v2212_v59, 0.5  ;;  %2399 = vst.msk [vmem:[%s3457_s15 + $0x8] sm:$0xff] %vm2397_vm7, %v2514_v61  ;;  %vm2301_vm11 = vcmp.gt.f32.partialorder %v2142_v62, 0.5 }
 0x630   :  { %v2527_v63 = vsel %vm2315_vm10, 1.0, %v2849_v60  ;;  %v2819_v0 = vpop.f32.mrf.mxu1  ;;  %v2513_v1 = vsel %vm2301_vm11, 1.0, %v2849_v60  ;;  %v2798_v2 = vpop.f32.mrf.mxu0 }
 0x631   :  { %2412 = vst.msk [vmem:[%s3457_s15 + $0x70] sm:$0xff] %vm2397_vm7, %v2527_v63  ;;  %vm2318_vm12 = vcmp.gt.f32.partialorder %v2819_v0, 0.5  ;;  %2398 = vst.msk [vmem:[%s3457_s15] sm:$0xff] %vm2397_vm7, %v2513_v1  ;;  %vm2304_vm13 = vcmp.gt.f32.partialorder %v2798_v2, 0.5 }
 0x632   :  { %v2530_v3 = vsel %vm2318_vm12, 1.0, %v2849_v60  ;;  %v2222_v4 = vpop.f32.mrf.mxu1  ;;  %v2516_v5 = vsel %vm2304_vm13, 1.0, %v2849_v60  ;;  %v2152_v6 = vpop.f32.mrf.mxu0 }
 0x633   :  { %2415 = vst.msk [vmem:[%s3457_s15 + $0x88] sm:$0xff] %vm2397_vm7, %v2530_v3  ;;  %vm2317_vm14 = vcmp.gt.f32.partialorder %v2222_v4, 0.5  ;;  %2401 = vst.msk [vmem:[%s3457_s15 + $0x18] sm:$0xff] %vm2397_vm7, %v2516_v5  ;;  %vm2303_vm15 = vcmp.gt.f32.partialorder %v2152_v6, 0.5 }
 0x634   :  { %v2529_v7 = vsel %vm2317_vm14, 1.0, %v2849_v60  ;;  %v2822_v8 = vpop.f32.mrf.mxu1  ;;  %v2515_v9 = vsel %vm2303_vm15, 1.0, %v2849_v60  ;;  %v2801_v10 = vpop.f32.mrf.mxu0 }
 0x635   :  { %2414 = vst.msk [vmem:[%s3457_s15 + $0x80] sm:$0xff] %vm2397_vm7, %v2529_v7  ;;  %vm2320_vm0 = vcmp.gt.f32.partialorder %v2822_v8, 0.5  ;;  %2400 = vst.msk [vmem:[%s3457_s15 + $0x10] sm:$0xff] %vm2397_vm7, %v2515_v9  ;;  %vm2306_vm1 = vcmp.gt.f32.partialorder %v2801_v10, 0.5 }
 0x636   :  { %v2532_v11 = vsel %vm2320_vm0, 1.0, %v2849_v60  ;;  %v2232_v12 = vpop.f32.mrf.mxu1  ;;  %v2518_v13 = vsel %vm2306_vm1, 1.0, %v2849_v60  ;;  %v2162_v14 = vpop.f32.mrf.mxu0 }
 0x637   :  { %2417 = vst.msk [vmem:[%s3457_s15 + $0x98] sm:$0xff] %vm2397_vm7, %v2532_v11  ;;  %vm2319_vm2 = vcmp.gt.f32.partialorder %v2232_v12, 0.5  ;;  %2403 = vst.msk [vmem:[%s3457_s15 + $0x28] sm:$0xff] %vm2397_vm7, %v2518_v13  ;;  %vm2305_vm3 = vcmp.gt.f32.partialorder %v2162_v14, 0.5 }
 0x638   :  { %v2531_v15 = vsel %vm2319_vm2, 1.0, %v2849_v60  ;;  %v2825_v16 = vpop.f32.mrf.mxu1  ;;  %v2517_v17 = vsel %vm2305_vm3, 1.0, %v2849_v60  ;;  %v2804_v18 = vpop.f32.mrf.mxu0 }
 0x639   :  { %2416 = vst.msk [vmem:[%s3457_s15 + $0x90] sm:$0xff] %vm2397_vm7, %v2531_v15  ;;  %vm2322_vm4 = vcmp.gt.f32.partialorder %v2825_v16, 0.5  ;;  %2402 = vst.msk [vmem:[%s3457_s15 + $0x20] sm:$0xff] %vm2397_vm7, %v2517_v17  ;;  %vm2308_vm5 = vcmp.gt.f32.partialorder %v2804_v18, 0.5 }
 0x63a   :  { %v2534_v19 = vsel %vm2322_vm4, 1.0, %v2849_v60  ;;  %v2242_v20 = vpop.f32.mrf.mxu1  ;;  %v2520_v21 = vsel %vm2308_vm5, 1.0, %v2849_v60  ;;  %v2172_v22 = vpop.f32.mrf.mxu0 }
 0x63b   :  { %2419 = vst.msk [vmem:[%s3457_s15 + $0xa8] sm:$0xff] %vm2397_vm7, %v2534_v19  ;;  %vm2321_vm6 = vcmp.gt.f32.partialorder %v2242_v20, 0.5  ;;  %2405 = vst.msk [vmem:[%s3457_s15 + $0x38] sm:$0xff] %vm2397_vm7, %v2520_v21  ;;  %vm2307_vm8 = vcmp.gt.f32.partialorder %v2172_v22, 0.5 }
 0x63c   :  { %v2533_v23 = vsel %vm2321_vm6, 1.0, %v2849_v60  ;;  %v2828_v24 = vpop.f32.mrf.mxu1  ;;  %v2519_v25 = vsel %vm2307_vm8, 1.0, %v2849_v60  ;;  %v2807_v26 = vpop.f32.mrf.mxu0 }
 0x63d   :  { %2418 = vst.msk [vmem:[%s3457_s15 + $0xa0] sm:$0xff] %vm2397_vm7, %v2533_v23  ;;  %vm2324_vm9 = vcmp.gt.f32.partialorder %v2828_v24, 0.5  ;;  %2404 = vst.msk [vmem:[%s3457_s15 + $0x30] sm:$0xff] %vm2397_vm7, %v2519_v25  ;;  %vm2310_vm10 = vcmp.gt.f32.partialorder %v2807_v26, 0.5 }
 0x63e   :  { %v2536_v27 = vsel %vm2324_vm9, 1.0, %v2849_v60  ;;  %v2252_v28 = vpop.f32.mrf.mxu1  ;;  %v2522_v29 = vsel %vm2310_vm10, 1.0, %v2849_v60  ;;  %v2182_v30 = vpop.f32.mrf.mxu0 }
 0x63f   :  { %2421 = vst.msk [vmem:[%s3457_s15 + $0xb8] sm:$0xff] %vm2397_vm7, %v2536_v27  ;;  %vm2323_vm11 = vcmp.gt.f32.partialorder %v2252_v28, 0.5  ;;  %2407 = vst.msk [vmem:[%s3457_s15 + $0x48] sm:$0xff] %vm2397_vm7, %v2522_v29  ;;  %vm2309_vm12 = vcmp.gt.f32.partialorder %v2182_v30, 0.5 }
 0x640   :  { %v2535_v31 = vsel %vm2323_vm11, 1.0, %v2849_v60  ;;  %v2831_v32 = vpop.f32.mrf.mxu1  ;;  %v2521_v33 = vsel %vm2309_vm12, 1.0, %v2849_v60  ;;  %v2810_v34 = vpop.f32.mrf.mxu0 }
 0x641   :  { %2420 = vst.msk [vmem:[%s3457_s15 + $0xb0] sm:$0xff] %vm2397_vm7, %v2535_v31  ;;  %vm2326_vm13 = vcmp.gt.f32.partialorder %v2831_v32, 0.5  ;;  %2406 = vst.msk [vmem:[%s3457_s15 + $0x40] sm:$0xff] %vm2397_vm7, %v2521_v33  ;;  %vm2312_vm14 = vcmp.gt.f32.partialorder %v2810_v34, 0.5 }
 0x642   :  { %v2538_v35 = vsel %vm2326_vm13, 1.0, %v2849_v60  ;;  %v2262_v36 = vpop.f32.mrf.mxu1  ;;  %v2524_v37 = vsel %vm2312_vm14, 1.0, %v2849_v60  ;;  %v2192_v38 = vpop.f32.mrf.mxu0 }
 0x643   :  { %2423 = vst.msk [vmem:[%s3457_s15 + $0xc8] sm:$0xff] %vm2397_vm7, %v2538_v35  ;;  %vm2325_vm15 = vcmp.gt.f32.partialorder %v2262_v36, 0.5  ;;  %2409 = vst.msk [vmem:[%s3457_s15 + $0x58] sm:$0xff] %vm2397_vm7, %v2524_v37  ;;  %vm2311_vm0 = vcmp.gt.f32.partialorder %v2192_v38, 0.5 }
 0x644   :  { %v2537_v39 = vsel %vm2325_vm15, 1.0, %v2849_v60  ;;  %v2834_v40 = vpop.f32.mrf.mxu1  ;;  %v2523_v41 = vsel %vm2311_vm0, 1.0, %v2849_v60  ;;  %v2813_v42 = vpop.f32.mrf.mxu0 }
 0x645   :  { %2422 = vst.msk [vmem:[%s3457_s15 + $0xc0] sm:$0xff] %vm2397_vm7, %v2537_v39  ;;  %vm2328_vm1 = vcmp.gt.f32.partialorder %v2834_v40, 0.5  ;;  %2408 = vst.msk [vmem:[%s3457_s15 + $0x50] sm:$0xff] %vm2397_vm7, %v2523_v41  ;;  %vm2314_vm2 = vcmp.gt.f32.partialorder %v2813_v42, 0.5 }
 0x646   :  { %v2540_v43 = vsel %vm2328_vm1, 1.0, %v2849_v60  ;;  %v2272_v44 = vpop.f32.mrf.mxu1  ;;  %v2526_v45 = vsel %vm2314_vm2, 1.0, %v2849_v60  ;;  %v2202_v46 = vpop.f32.mrf.mxu0 }
 0x647   :  { %2425 = vst.msk [vmem:[%s3457_s15 + $0xd8] sm:$0xff] %vm2397_vm7, %v2540_v43  ;;  %vm2327_vm3 = vcmp.gt.f32.partialorder %v2272_v44, 0.5  ;;  %2411 = vst.msk [vmem:[%s3457_s15 + $0x68] sm:$0xff] %vm2397_vm7, %v2526_v45  ;;  %vm2313_vm4 = vcmp.gt.f32.partialorder %v2202_v46, 0.5 }
 0x648   :  { %v2539_v47 = vsel %vm2327_vm3, 1.0, %v2849_v60  ;;  %v2837_v48 = vpop.f32.mrf.mxu1  ;;  %v2525_v49 = vsel %vm2313_vm4, 1.0, %v2849_v60 }
 0x649   :  { %2424 = vst.msk [vmem:[%s3457_s15 + $0xd0] sm:$0xff] %vm2397_vm7, %v2539_v47  ;;  %vm2330_vm5 = vcmp.gt.f32.partialorder %v2837_v48, 0.5  ;;  %2410 = vst.msk [vmem:[%s3457_s15 + $0x60] sm:$0xff] %vm2397_vm7, %v2525_v49 }
 0x64a   :  { %v2542_v50 = vsel %vm2330_vm5, 1.0, %v2849_v60  ;;  %v2282_v51 = vpop.f32.mrf.mxu1 }
 0x64b   :  { %2427 = vst.msk [vmem:[%s3457_s15 + $0xe8] sm:$0xff] %vm2397_vm7, %v2542_v50  ;;  %vm2329_vm6 = vcmp.gt.f32.partialorder %v2282_v51, 0.5 }
 0x64c   :  { %v2541_v52 = vsel %vm2329_vm6, 1.0, %v2849_v60  ;;  %v2840_v53 = vpop.f32.mrf.mxu1 }
 0x64d   :  { %2426 = vst.msk [vmem:[%s3457_s15 + $0xe0] sm:$0xff] %vm2397_vm7, %v2541_v52  ;;  %vm2332_vm8 = vcmp.gt.f32.partialorder %v2840_v53, 0.5 }
 0x64e   :  { %v2544_v54 = vsel %vm2332_vm8, 1.0, %v2849_v60  ;;  %v2292_v55 = vpop.f32.mrf.mxu1 }
 0x64f   :  { %2429 = vst.msk [vmem:[%s3457_s15 + $0xf8] sm:$0xff] %vm2397_vm7, %v2544_v54  ;;  %vm2331_vm9 = vcmp.gt.f32.partialorder %v2292_v55, 0.5 }
 0x650   :  { %v2543_v56 = vsel %vm2331_vm9, 1.0, %v2849_v60 }
 0x651   :  { %2428 = vst.msk [vmem:[%s3457_s15 + $0xf0] sm:$0xff] %vm2397_vm7, %v2543_v56 }

</bundles_post_ra>
